<compile_context>
chip_gen: v7x
topology: tpu7x:2x2x1
jax: 0.10.0
libtpu: 0.0.40
codegen_flags: <defaults>
</compile_context>

<pallas_src>
import functools

import jax
import jax.numpy as jnp
from jax.experimental import pallas as pl
from jax.experimental.pallas import tpu as pltpu


def bilstm_kernel(x_ref, wx_ref, wh_ref, b_ref, h0_ref, c0_ref, out_ref, *, T, H):
    """x_ref: (T, 2H) rows = [emb[t] | emb[T-1-t]];
    wx_ref/wh_ref: (2H, 8H) block-structured, gate-interleaved columns
      [f_f|f_b|i_f|i_b|c_f|c_b|o_f|o_b];
    b_ref: (1, 8H) (bx+bh folded, same column order); h0_ref/c0_ref: (1, 2H) [h0|h0];
    out_ref: (T, 2H) -> row t = [forward h_t | backward h at reverse step t]."""
    H2 = 2 * H

    # Hoisted input projection for BOTH directions: one matmul, off the serial chain.
    gx = (jnp.dot(x_ref[...], wx_ref[...], preferred_element_type=jnp.float32)
          + b_ref[...])                                   # (T, 8H)

    wh = wh_ref[...]                                      # (2H, 8H), loop invariant
    # TODO(synk): if bundle dumps show Mosaic re-pushing this RHS every unrolled step, stage it
    # once with pltpu.matmul_push_rhs before the loop + matmul_acc_lhs/matmul_pop per step.

    h = h0_ref[...]                                       # (1, 2H) lane-packed [h_f | h_b]
    c = c0_ref[...]                                       # (1, 2H)

    # Full Python unroll: T is static and small.  For larger T switch to lax.fori_loop carrying
    # (h, c) and writing out_ref[t] per iteration to bound live ranges.
    for t in range(T):
        # The block-diagonal recurrent matmul is the only op left on the serial h->h chain.
        g = gx[t:t + 1, :] + jnp.dot(h, wh, preferred_element_type=jnp.float32)  # (1, 8H)

        # Each nonlinearity runs once over a (1, 2H) lane group covering both directions.
        f = jax.nn.sigmoid(g[:, 0 * H2:1 * H2])
        i = jax.nn.sigmoid(g[:, 1 * H2:2 * H2])
        c_bar = jnp.tanh(g[:, 2 * H2:3 * H2])
        o = jax.nn.sigmoid(g[:, 3 * H2:4 * H2])

        c = f * c + i * c_bar
        h = o * jnp.tanh(c)

        # Lane-packed state is already the output row; store it now (no epilogue concat).
        out_ref[t:t + 1, :] = h.astype(out_ref.dtype)


def _interleave_gate_blocks(m_f, m_b, H):
    """(rows, 4H) x 2 -> (rows, 8H) with H-wide blocks ordered [f_f|f_b|i_f|i_b|c_f|c_b|o_f|o_b]."""
    rows = m_f.shape[0]
    f4 = m_f.reshape(rows, 4, H)
    b4 = m_b.reshape(rows, 4, H)
    return jnp.stack([f4, b4], axis=2).reshape(rows, 8 * H)


def encoder_rnn_forward(tokens, emb_table, params_f, params_b, h0, c0):
    """tokens: (T, 1) int32; emb_table: (V, H); params_*: (Wx, Wh, bx, bh) with W: (H, 4H)
    packed [f, i, c, o], b: (1, 4H); h0/c0: (1, H).  Returns encoder_hidden (1, T, 2H)."""
    T = tokens.shape[0]
    H = emb_table.shape[1]

    # Embedding lookup is a gather -> plain-JAX glue (negligible at these sizes).
    # TODO(synk): at production vocab/H move the gather in-kernel via
    # PrefetchScalarGridSpec(num_scalar_prefetch=1) + a pl.Element row-gather BlockSpec.
    emb = jnp.take(emb_table, tokens[:, 0], axis=0)       # (T, H)

    # Lane-pack both directions' inputs: row t = [emb[t] | emb[T-1-t]].
    x2 = jnp.concatenate([emb, emb[::-1, :]], axis=-1)    # (T, 2H)

    wx_f, wh_f, bx_f, bh_f = params_f
    wx_b, wh_b, bx_b, bh_b = params_b
    zeros = jnp.zeros((H, 4 * H), jnp.float32)

    # Block-structured (2H, 8H) weights: forward input/state rows 0:H feed only *_f gate columns,
    # backward rows H:2H feed only *_b, with like-gates lane-adjacent for fused nonlinearities.
    wx = jnp.concatenate([_interleave_gate_blocks(wx_f, zeros, H),
                          _interleave_gate_blocks(zeros, wx_b, H)], axis=0)   # (2H, 8H)
    wh = jnp.concatenate([_interleave_gate_blocks(wh_f, zeros, H),
                          _interleave_gate_blocks(zeros, wh_b, H)], axis=0)   # (2H, 8H)
    # Fold the two biases per direction and interleave the same way.
    b = _interleave_gate_blocks(bx_f + bh_f, bx_b + bh_b, H)                  # (1, 8H)
    # TODO(synk): at large H cast wx/wh + matmul LHS to bf16 on v6e/v7x (keep gates/c in f32; stay
    # f32 on v5e — no bf16 VPU/EUP) and mind v7x's 64 MiB VMEM for the (2H, 8H) weights.

    h0p = jnp.concatenate([h0, h0], axis=-1)              # (1, 2H)
    c0p = jnp.concatenate([c0, c0], axis=-1)              # (1, 2H)

    vmem = lambda: pl.BlockSpec(memory_space=pltpu.MemorySpace.VMEM)
    out = pl.pallas_call(
        functools.partial(bilstm_kernel, T=T, H=H),
        out_shape=jax.ShapeDtypeStruct((T, 2 * H), jnp.float32),
        in_specs=[vmem() for _ in range(6)],
        out_specs=vmem(),
    )(x2, wx, wh, b, h0p, c0p)

    return out[None, :, :]                                # (1, T, 2H)


# ---------------- pure-JAX reference (mirrors the PyTorch code) ----------------
def _ref_cell(x, h, c, Wx, Wh, bx, bh, H):
    g = x @ Wx + bx + h @ Wh + bh
    f = jax.nn.sigmoid(g[:, 0 * H:1 * H])
    i = jax.nn.sigmoid(g[:, 1 * H:2 * H])
    c_bar = jnp.tanh(g[:, 2 * H:3 * H])
    o = jax.nn.sigmoid(g[:, 3 * H:4 * H])
    c_n = f * c + i * c_bar
    h_n = o * jnp.tanh(c_n)
    return h_n, c_n


def encoder_rnn_reference(tokens, emb_table, params_f, params_b, h0, c0):
    T = tokens.shape[0]
    H = emb_table.shape[1]
    emb = emb_table[tokens[:, 0]]
    h, c = h0, c0
    fwd = []
    for t in range(T):
        h, c = _ref_cell(emb[t:t + 1], h, c, *params_f, H=H)
        fwd.append(h)
    h, c = h0, c0
    bwd = []
    for t in reversed(range(T)):
        h, c = _ref_cell(emb[t:t + 1], h, c, *params_b, H=H)
        bwd.append(h)
    fwd = jnp.concatenate(fwd, axis=0)   # (T, H)
    bwd = jnp.concatenate(bwd, axis=0)   # (T, H), reversed-time order (matches the PyTorch cat)
    return jnp.concatenate([fwd, bwd], axis=-1)[None, :, :]


def _xavier_uniform(key, shape):
    fan_in, fan_out = shape[0], shape[1]
    bound = (6.0 / (fan_in + fan_out)) ** 0.5
    return jax.random.uniform(key, shape, jnp.float32, minval=-bound, maxval=bound)


if __name__ == "__main__":
    VOCAB = 16      # input_size of the EncoderRNN (embedding vocabulary)
    H = 32          # hidden_size
    T = 8           # sequence length

    key = jax.random.PRNGKey(0)
    k_emb, k_tok, *k_w = jax.random.split(key, 2 + 4)

    emb_table = jax.random.normal(k_emb, (VOCAB, H), jnp.float32)

    def make_cell_params(k):
        k1, k2 = jax.random.split(k)
        Wx = _xavier_uniform(k1, (H, 4 * H))   # packed [f, i, c, o]
        Wh = _xavier_uniform(k2, (H, 4 * H))
        bx = jnp.zeros((1, 4 * H), jnp.float32)
        bh = jnp.zeros((1, 4 * H), jnp.float32)
        return (Wx, Wh, bx, bh)

    params_f = make_cell_params(k_w[0])
    params_b = make_cell_params(k_w[1])

    tokens = jax.random.randint(k_tok, (T, 1), 0, VOCAB, dtype=jnp.int32)

    # get_initial_hidden_state() -> zeros (shared by both directions)
    h0 = jnp.zeros((1, H), jnp.float32)
    c0 = jnp.zeros((1, H), jnp.float32)

    out = encoder_rnn_forward(tokens, emb_table, params_f, params_b, h0, c0)
    out = jax.block_until_ready(out)

    ref = encoder_rnn_reference(tokens, emb_table, params_f, params_b, h0, c0)
    assert out.shape == (1, T, 2 * H)
    assert jnp.allclose(out, ref, atol=5e-5, rtol=5e-5)

    print("KERNEL_OK")
</pallas_src>

<mosaic_0001>
module attributes {stable_mosaic.version = 11 : i64} {
  func.func @bilstm_kernel(%arg0: memref<8x64xf32, #tpu.memory_space<vmem>>, %arg1: memref<64x256xf32, #tpu.memory_space<vmem>>, %arg2: memref<64x256xf32, #tpu.memory_space<vmem>>, %arg3: memref<1x256xf32, #tpu.memory_space<vmem>>, %arg4: memref<1x64xf32, #tpu.memory_space<vmem>>, %arg5: memref<1x64xf32, #tpu.memory_space<vmem>>, %arg6: memref<8x64xf32, #tpu.memory_space<vmem>>) attributes {dimension_semantics = [], scalar_prefetch = 0 : i64, scratch_operands = 0 : i64, tpu.core_type = #tpu.core_type<tc>} {
    %c0 = arith.constant 0 : index
    %c0_0 = arith.constant 0 : index
    %0 = vector.load %arg0[%c0, %c0_0] : memref<8x64xf32, #tpu.memory_space<vmem>>, vector<8x64xf32>
    %c0_1 = arith.constant 0 : index
    %c0_2 = arith.constant 0 : index
    %1 = vector.load %arg1[%c0_1, %c0_2] : memref<64x256xf32, #tpu.memory_space<vmem>>, vector<64x256xf32>
    %cst = arith.constant dense<0.000000e+00> : vector<8x256xf32>
    %2 = tpu.matmul %0, %1, %cst {dimension_numbers = #tpu.dot_dimension_numbers<[1], [0], [0], [1], [0, 0, 1, 1], [], []>} : vector<8x64xf32>, vector<64x256xf32>, vector<8x256xf32> -> vector<8x256xf32>
    %c0_3 = arith.constant 0 : index
    %c0_4 = arith.constant 0 : index
    %3 = vector.load %arg3[%c0_3, %c0_4] : memref<1x256xf32, #tpu.memory_space<vmem>>, vector<1x256xf32>
    %4 = vector.broadcast %3 : vector<1x256xf32> to vector<8x256xf32>
    %5 = arith.addf %2, %4 : vector<8x256xf32>
    %c0_5 = arith.constant 0 : index
    %c0_6 = arith.constant 0 : index
    %6 = vector.load %arg2[%c0_5, %c0_6] : memref<64x256xf32, #tpu.memory_space<vmem>>, vector<64x256xf32>
    %c0_7 = arith.constant 0 : index
    %c0_8 = arith.constant 0 : index
    %7 = vector.load %arg4[%c0_7, %c0_8] : memref<1x64xf32, #tpu.memory_space<vmem>>, vector<1x64xf32>
    %c0_9 = arith.constant 0 : index
    %c0_10 = arith.constant 0 : index
    %8 = vector.load %arg5[%c0_9, %c0_10] : memref<1x64xf32, #tpu.memory_space<vmem>>, vector<1x64xf32>
    %9 = vector.extract_strided_slice %5 {offsets = [0, 0], sizes = [1, 256], strides = [1, 1]} : vector<8x256xf32> to vector<1x256xf32>
    %cst_11 = arith.constant dense<0.000000e+00> : vector<1x256xf32>
    %10 = tpu.matmul %7, %6, %cst_11 {dimension_numbers = #tpu.dot_dimension_numbers<[1], [0], [0], [1], [0, 0, 1, 1], [], []>} : vector<1x64xf32>, vector<64x256xf32>, vector<1x256xf32> -> vector<1x256xf32>
    %11 = arith.addf %9, %10 : vector<1x256xf32>
    %12 = vector.extract_strided_slice %11 {offsets = [0, 0], sizes = [1, 64], strides = [1, 1]} : vector<1x256xf32> to vector<1x64xf32>
    %13 = arith.negf %12 : vector<1x64xf32>
    %14 = math.exp %13 : vector<1x64xf32>
    %cst_12 = arith.constant 1.000000e+00 : f32
    %15 = vector.broadcast %cst_12 : f32 to vector<1x64xf32>
    %16 = arith.addf %15, %14 : vector<1x64xf32>
    %17 = arith.divf %15, %16 : vector<1x64xf32>
    %18 = vector.extract_strided_slice %11 {offsets = [0, 64], sizes = [1, 64], strides = [1, 1]} : vector<1x256xf32> to vector<1x64xf32>
    %19 = arith.negf %18 : vector<1x64xf32>
    %20 = math.exp %19 : vector<1x64xf32>
    %cst_13 = arith.constant 1.000000e+00 : f32
    %21 = vector.broadcast %cst_13 : f32 to vector<1x64xf32>
    %22 = arith.addf %21, %20 : vector<1x64xf32>
    %23 = arith.divf %21, %22 : vector<1x64xf32>
    %24 = vector.extract_strided_slice %11 {offsets = [0, 128], sizes = [1, 64], strides = [1, 1]} : vector<1x256xf32> to vector<1x64xf32>
    %25 = math.tanh %24 : vector<1x64xf32>
    %26 = vector.extract_strided_slice %11 {offsets = [0, 192], sizes = [1, 64], strides = [1, 1]} : vector<1x256xf32> to vector<1x64xf32>
    %27 = arith.negf %26 : vector<1x64xf32>
    %28 = math.exp %27 : vector<1x64xf32>
    %cst_14 = arith.constant 1.000000e+00 : f32
    %29 = vector.broadcast %cst_14 : f32 to vector<1x64xf32>
    %30 = arith.addf %29, %28 : vector<1x64xf32>
    %31 = arith.divf %29, %30 : vector<1x64xf32>
    %32 = arith.mulf %17, %8 : vector<1x64xf32>
    %33 = arith.mulf %23, %25 : vector<1x64xf32>
    %34 = arith.addf %32, %33 : vector<1x64xf32>
    %35 = math.tanh %34 : vector<1x64xf32>
    %36 = arith.mulf %31, %35 : vector<1x64xf32>
    %c0_15 = arith.constant 0 : index
    %c0_16 = arith.constant 0 : index
    %37 = vector.load %arg6[%c0_15, %c0_16] : memref<8x64xf32, #tpu.memory_space<vmem>>, vector<1x64xf32>
    tpu.vector_store %arg6[%c0_15, %c0_16], %36 {strides = array<i32>} : memref<8x64xf32, #tpu.memory_space<vmem>>, vector<1x64xf32>,
    %38 = vector.extract_strided_slice %5 {offsets = [1, 0], sizes = [1, 256], strides = [1, 1]} : vector<8x256xf32> to vector<1x256xf32>
    %cst_17 = arith.constant dense<0.000000e+00> : vector<1x256xf32>
    %39 = tpu.matmul %36, %6, %cst_17 {dimension_numbers = #tpu.dot_dimension_numbers<[1], [0], [0], [1], [0, 0, 1, 1], [], []>} : vector<1x64xf32>, vector<64x256xf32>, vector<1x256xf32> -> vector<1x256xf32>
    %40 = arith.addf %38, %39 : vector<1x256xf32>
    %41 = vector.extract_strided_slice %40 {offsets = [0, 0], sizes = [1, 64], strides = [1, 1]} : vector<1x256xf32> to vector<1x64xf32>
    %42 = arith.negf %41 : vector<1x64xf32>
    %43 = math.exp %42 : vector<1x64xf32>
    %cst_18 = arith.constant 1.000000e+00 : f32
    %44 = vector.broadcast %cst_18 : f32 to vector<1x64xf32>
    %45 = arith.addf %44, %43 : vector<1x64xf32>
    %46 = arith.divf %44, %45 : vector<1x64xf32>
    %47 = vector.extract_strided_slice %40 {offsets = [0, 64], sizes = [1, 64], strides = [1, 1]} : vector<1x256xf32> to vector<1x64xf32>
    %48 = arith.negf %47 : vector<1x64xf32>
    %49 = math.exp %48 : vector<1x64xf32>
    %cst_19 = arith.constant 1.000000e+00 : f32
    %50 = vector.broadcast %cst_19 : f32 to vector<1x64xf32>
    %51 = arith.addf %50, %49 : vector<1x64xf32>
    %52 = arith.divf %50, %51 : vector<1x64xf32>
    %53 = vector.extract_strided_slice %40 {offsets = [0, 128], sizes = [1, 64], strides = [1, 1]} : vector<1x256xf32> to vector<1x64xf32>
    %54 = math.tanh %53 : vector<1x64xf32>
    %55 = vector.extract_strided_slice %40 {offsets = [0, 192], sizes = [1, 64], strides = [1, 1]} : vector<1x256xf32> to vector<1x64xf32>
    %56 = arith.negf %55 : vector<1x64xf32>
    %57 = math.exp %56 : vector<1x64xf32>
    %cst_20 = arith.constant 1.000000e+00 : f32
    %58 = vector.broadcast %cst_20 : f32 to vector<1x64xf32>
    %59 = arith.addf %58, %57 : vector<1x64xf32>
    %60 = arith.divf %58, %59 : vector<1x64xf32>
    %61 = arith.mulf %46, %34 : vector<1x64xf32>
    %62 = arith.mulf %52, %54 : vector<1x64xf32>
    %63 = arith.addf %61, %62 : vector<1x64xf32>
    %64 = math.tanh %63 : vector<1x64xf32>
    %65 = arith.mulf %60, %64 : vector<1x64xf32>
    %c1 = arith.constant 1 : index
    %c0_21 = arith.constant 0 : index
    %66 = vector.load %arg6[%c1, %c0_21] : memref<8x64xf32, #tpu.memory_space<vmem>>, vector<1x64xf32>
    tpu.vector_store %arg6[%c1, %c0_21], %65 {strides = array<i32>} : memref<8x64xf32, #tpu.memory_space<vmem>>, vector<1x64xf32>,
    %67 = vector.extract_strided_slice %5 {offsets = [2, 0], sizes = [1, 256], strides = [1, 1]} : vector<8x256xf32> to vector<1x256xf32>
    %cst_22 = arith.constant dense<0.000000e+00> : vector<1x256xf32>
    %68 = tpu.matmul %65, %6, %cst_22 {dimension_numbers = #tpu.dot_dimension_numbers<[1], [0], [0], [1], [0, 0, 1, 1], [], []>} : vector<1x64xf32>, vector<64x256xf32>, vector<1x256xf32> -> vector<1x256xf32>
    %69 = arith.addf %67, %68 : vector<1x256xf32>
    %70 = vector.extract_strided_slice %69 {offsets = [0, 0], sizes = [1, 64], strides = [1, 1]} : vector<1x256xf32> to vector<1x64xf32>
    %71 = arith.negf %70 : vector<1x64xf32>
    %72 = math.exp %71 : vector<1x64xf32>
    %cst_23 = arith.constant 1.000000e+00 : f32
    %73 = vector.broadcast %cst_23 : f32 to vector<1x64xf32>
    %74 = arith.addf %73, %72 : vector<1x64xf32>
    %75 = arith.divf %73, %74 : vector<1x64xf32>
    %76 = vector.extract_strided_slice %69 {offsets = [0, 64], sizes = [1, 64], strides = [1, 1]} : vector<1x256xf32> to vector<1x64xf32>
    %77 = arith.negf %76 : vector<1x64xf32>
    %78 = math.exp %77 : vector<1x64xf32>
    %cst_24 = arith.constant 1.000000e+00 : f32
    %79 = vector.broadcast %cst_24 : f32 to vector<1x64xf32>
    %80 = arith.addf %79, %78 : vector<1x64xf32>
    %81 = arith.divf %79, %80 : vector<1x64xf32>
    %82 = vector.extract_strided_slice %69 {offsets = [0, 128], sizes = [1, 64], strides = [1, 1]} : vector<1x256xf32> to vector<1x64xf32>
    %83 = math.tanh %82 : vector<1x64xf32>
    %84 = vector.extract_strided_slice %69 {offsets = [0, 192], sizes = [1, 64], strides = [1, 1]} : vector<1x256xf32> to vector<1x64xf32>
    %85 = arith.negf %84 : vector<1x64xf32>
    %86 = math.exp %85 : vector<1x64xf32>
    %cst_25 = arith.constant 1.000000e+00 : f32
    %87 = vector.broadcast %cst_25 : f32 to vector<1x64xf32>
    %88 = arith.addf %87, %86 : vector<1x64xf32>
    %89 = arith.divf %87, %88 : vector<1x64xf32>
    %90 = arith.mulf %75, %63 : vector<1x64xf32>
    %91 = arith.mulf %81, %83 : vector<1x64xf32>
    %92 = arith.addf %90, %91 : vector<1x64xf32>
    %93 = math.tanh %92 : vector<1x64xf32>
    %94 = arith.mulf %89, %93 : vector<1x64xf32>
    %c2 = arith.constant 2 : index
    %c0_26 = arith.constant 0 : index
    %95 = vector.load %arg6[%c2, %c0_26] : memref<8x64xf32, #tpu.memory_space<vmem>>, vector<1x64xf32>
    tpu.vector_store %arg6[%c2, %c0_26], %94 {strides = array<i32>} : memref<8x64xf32, #tpu.memory_space<vmem>>, vector<1x64xf32>,
    %96 = vector.extract_strided_slice %5 {offsets = [3, 0], sizes = [1, 256], strides = [1, 1]} : vector<8x256xf32> to vector<1x256xf32>
    %cst_27 = arith.constant dense<0.000000e+00> : vector<1x256xf32>
    %97 = tpu.matmul %94, %6, %cst_27 {dimension_numbers = #tpu.dot_dimension_numbers<[1], [0], [0], [1], [0, 0, 1, 1], [], []>} : vector<1x64xf32>, vector<64x256xf32>, vector<1x256xf32> -> vector<1x256xf32>
    %98 = arith.addf %96, %97 : vector<1x256xf32>
    %99 = vector.extract_strided_slice %98 {offsets = [0, 0], sizes = [1, 64], strides = [1, 1]} : vector<1x256xf32> to vector<1x64xf32>
    %100 = arith.negf %99 : vector<1x64xf32>
    %101 = math.exp %100 : vector<1x64xf32>
    %cst_28 = arith.constant 1.000000e+00 : f32
    %102 = vector.broadcast %cst_28 : f32 to vector<1x64xf32>
    %103 = arith.addf %102, %101 : vector<1x64xf32>
    %104 = arith.divf %102, %103 : vector<1x64xf32>
    %105 = vector.extract_strided_slice %98 {offsets = [0, 64], sizes = [1, 64], strides = [1, 1]} : vector<1x256xf32> to vector<1x64xf32>
    %106 = arith.negf %105 : vector<1x64xf32>
    %107 = math.exp %106 : vector<1x64xf32>
    %cst_29 = arith.constant 1.000000e+00 : f32
    %108 = vector.broadcast %cst_29 : f32 to vector<1x64xf32>
    %109 = arith.addf %108, %107 : vector<1x64xf32>
    %110 = arith.divf %108, %109 : vector<1x64xf32>
    %111 = vector.extract_strided_slice %98 {offsets = [0, 128], sizes = [1, 64], strides = [1, 1]} : vector<1x256xf32> to vector<1x64xf32>
    %112 = math.tanh %111 : vector<1x64xf32>
    %113 = vector.extract_strided_slice %98 {offsets = [0, 192], sizes = [1, 64], strides = [1, 1]} : vector<1x256xf32> to vector<1x64xf32>
    %114 = arith.negf %113 : vector<1x64xf32>
    %115 = math.exp %114 : vector<1x64xf32>
    %cst_30 = arith.constant 1.000000e+00 : f32
    %116 = vector.broadcast %cst_30 : f32 to vector<1x64xf32>
    %117 = arith.addf %116, %115 : vector<1x64xf32>
    %118 = arith.divf %116, %117 : vector<1x64xf32>
    %119 = arith.mulf %104, %92 : vector<1x64xf32>
    %120 = arith.mulf %110, %112 : vector<1x64xf32>
    %121 = arith.addf %119, %120 : vector<1x64xf32>
    %122 = math.tanh %121 : vector<1x64xf32>
    %123 = arith.mulf %118, %122 : vector<1x64xf32>
    %c3 = arith.constant 3 : index
    %c0_31 = arith.constant 0 : index
    %124 = vector.load %arg6[%c3, %c0_31] : memref<8x64xf32, #tpu.memory_space<vmem>>, vector<1x64xf32>
    tpu.vector_store %arg6[%c3, %c0_31], %123 {strides = array<i32>} : memref<8x64xf32, #tpu.memory_space<vmem>>, vector<1x64xf32>,
    %125 = vector.extract_strided_slice %5 {offsets = [4, 0], sizes = [1, 256], strides = [1, 1]} : vector<8x256xf32> to vector<1x256xf32>
    %cst_32 = arith.constant dense<0.000000e+00> : vector<1x256xf32>
    %126 = tpu.matmul %123, %6, %cst_32 {dimension_numbers = #tpu.dot_dimension_numbers<[1], [0], [0], [1], [0, 0, 1, 1], [], []>} : vector<1x64xf32>, vector<64x256xf32>, vector<1x256xf32> -> vector<1x256xf32>
    %127 = arith.addf %125, %126 : vector<1x256xf32>
    %128 = vector.extract_strided_slice %127 {offsets = [0, 0], sizes = [1, 64], strides = [1, 1]} : vector<1x256xf32> to vector<1x64xf32>
    %129 = arith.negf %128 : vector<1x64xf32>
    %130 = math.exp %129 : vector<1x64xf32>
    %cst_33 = arith.constant 1.000000e+00 : f32
    %131 = vector.broadcast %cst_33 : f32 to vector<1x64xf32>
    %132 = arith.addf %131, %130 : vector<1x64xf32>
    %133 = arith.divf %131, %132 : vector<1x64xf32>
    %134 = vector.extract_strided_slice %127 {offsets = [0, 64], sizes = [1, 64], strides = [1, 1]} : vector<1x256xf32> to vector<1x64xf32>
    %135 = arith.negf %134 : vector<1x64xf32>
    %136 = math.exp %135 : vector<1x64xf32>
    %cst_34 = arith.constant 1.000000e+00 : f32
    %137 = vector.broadcast %cst_34 : f32 to vector<1x64xf32>
    %138 = arith.addf %137, %136 : vector<1x64xf32>
    %139 = arith.divf %137, %138 : vector<1x64xf32>
    %140 = vector.extract_strided_slice %127 {offsets = [0, 128], sizes = [1, 64], strides = [1, 1]} : vector<1x256xf32> to vector<1x64xf32>
    %141 = math.tanh %140 : vector<1x64xf32>
    %142 = vector.extract_strided_slice %127 {offsets = [0, 192], sizes = [1, 64], strides = [1, 1]} : vector<1x256xf32> to vector<1x64xf32>
    %143 = arith.negf %142 : vector<1x64xf32>
    %144 = math.exp %143 : vector<1x64xf32>
    %cst_35 = arith.constant 1.000000e+00 : f32
    %145 = vector.broadcast %cst_35 : f32 to vector<1x64xf32>
    %146 = arith.addf %145, %144 : vector<1x64xf32>
    %147 = arith.divf %145, %146 : vector<1x64xf32>
    %148 = arith.mulf %133, %121 : vector<1x64xf32>
    %149 = arith.mulf %139, %141 : vector<1x64xf32>
    %150 = arith.addf %148, %149 : vector<1x64xf32>
    %151 = math.tanh %150 : vector<1x64xf32>
    %152 = arith.mulf %147, %151 : vector<1x64xf32>
    %c4 = arith.constant 4 : index
    %c0_36 = arith.constant 0 : index
    %153 = vector.load %arg6[%c4, %c0_36] : memref<8x64xf32, #tpu.memory_space<vmem>>, vector<1x64xf32>
    tpu.vector_store %arg6[%c4, %c0_36], %152 {strides = array<i32>} : memref<8x64xf32, #tpu.memory_space<vmem>>, vector<1x64xf32>,
    %154 = vector.extract_strided_slice %5 {offsets = [5, 0], sizes = [1, 256], strides = [1, 1]} : vector<8x256xf32> to vector<1x256xf32>
    %cst_37 = arith.constant dense<0.000000e+00> : vector<1x256xf32>
    %155 = tpu.matmul %152, %6, %cst_37 {dimension_numbers = #tpu.dot_dimension_numbers<[1], [0], [0], [1], [0, 0, 1, 1], [], []>} : vector<1x64xf32>, vector<64x256xf32>, vector<1x256xf32> -> vector<1x256xf32>
    %156 = arith.addf %154, %155 : vector<1x256xf32>
    %157 = vector.extract_strided_slice %156 {offsets = [0, 0], sizes = [1, 64], strides = [1, 1]} : vector<1x256xf32> to vector<1x64xf32>
    %158 = arith.negf %157 : vector<1x64xf32>
    %159 = math.exp %158 : vector<1x64xf32>
    %cst_38 = arith.constant 1.000000e+00 : f32
    %160 = vector.broadcast %cst_38 : f32 to vector<1x64xf32>
    %161 = arith.addf %160, %159 : vector<1x64xf32>
    %162 = arith.divf %160, %161 : vector<1x64xf32>
    %163 = vector.extract_strided_slice %156 {offsets = [0, 64], sizes = [1, 64], strides = [1, 1]} : vector<1x256xf32> to vector<1x64xf32>
    %164 = arith.negf %163 : vector<1x64xf32>
    %165 = math.exp %164 : vector<1x64xf32>
    %cst_39 = arith.constant 1.000000e+00 : f32
    %166 = vector.broadcast %cst_39 : f32 to vector<1x64xf32>
    %167 = arith.addf %166, %165 : vector<1x64xf32>
    %168 = arith.divf %166, %167 : vector<1x64xf32>
    %169 = vector.extract_strided_slice %156 {offsets = [0, 128], sizes = [1, 64], strides = [1, 1]} : vector<1x256xf32> to vector<1x64xf32>
    %170 = math.tanh %169 : vector<1x64xf32>
    %171 = vector.extract_strided_slice %156 {offsets = [0, 192], sizes = [1, 64], strides = [1, 1]} : vector<1x256xf32> to vector<1x64xf32>
    %172 = arith.negf %171 : vector<1x64xf32>
    %173 = math.exp %172 : vector<1x64xf32>
    %cst_40 = arith.constant 1.000000e+00 : f32
    %174 = vector.broadcast %cst_40 : f32 to vector<1x64xf32>
    %175 = arith.addf %174, %173 : vector<1x64xf32>
    %176 = arith.divf %174, %175 : vector<1x64xf32>
    %177 = arith.mulf %162, %150 : vector<1x64xf32>
    %178 = arith.mulf %168, %170 : vector<1x64xf32>
    %179 = arith.addf %177, %178 : vector<1x64xf32>
    %180 = math.tanh %179 : vector<1x64xf32>
    %181 = arith.mulf %176, %180 : vector<1x64xf32>
    %c5 = arith.constant 5 : index
    %c0_41 = arith.constant 0 : index
    %182 = vector.load %arg6[%c5, %c0_41] : memref<8x64xf32, #tpu.memory_space<vmem>>, vector<1x64xf32>
    tpu.vector_store %arg6[%c5, %c0_41], %181 {strides = array<i32>} : memref<8x64xf32, #tpu.memory_space<vmem>>, vector<1x64xf32>,
    %183 = vector.extract_strided_slice %5 {offsets = [6, 0], sizes = [1, 256], strides = [1, 1]} : vector<8x256xf32> to vector<1x256xf32>
    %cst_42 = arith.constant dense<0.000000e+00> : vector<1x256xf32>
    %184 = tpu.matmul %181, %6, %cst_42 {dimension_numbers = #tpu.dot_dimension_numbers<[1], [0], [0], [1], [0, 0, 1, 1], [], []>} : vector<1x64xf32>, vector<64x256xf32>, vector<1x256xf32> -> vector<1x256xf32>
    %185 = arith.addf %183, %184 : vector<1x256xf32>
    %186 = vector.extract_strided_slice %185 {offsets = [0, 0], sizes = [1, 64], strides = [1, 1]} : vector<1x256xf32> to vector<1x64xf32>
    %187 = arith.negf %186 : vector<1x64xf32>
    %188 = math.exp %187 : vector<1x64xf32>
    %cst_43 = arith.constant 1.000000e+00 : f32
    %189 = vector.broadcast %cst_43 : f32 to vector<1x64xf32>
    %190 = arith.addf %189, %188 : vector<1x64xf32>
    %191 = arith.divf %189, %190 : vector<1x64xf32>
    %192 = vector.extract_strided_slice %185 {offsets = [0, 64], sizes = [1, 64], strides = [1, 1]} : vector<1x256xf32> to vector<1x64xf32>
    %193 = arith.negf %192 : vector<1x64xf32>
    %194 = math.exp %193 : vector<1x64xf32>
    %cst_44 = arith.constant 1.000000e+00 : f32
    %195 = vector.broadcast %cst_44 : f32 to vector<1x64xf32>
    %196 = arith.addf %195, %194 : vector<1x64xf32>
    %197 = arith.divf %195, %196 : vector<1x64xf32>
    %198 = vector.extract_strided_slice %185 {offsets = [0, 128], sizes = [1, 64], strides = [1, 1]} : vector<1x256xf32> to vector<1x64xf32>
    %199 = math.tanh %198 : vector<1x64xf32>
    %200 = vector.extract_strided_slice %185 {offsets = [0, 192], sizes = [1, 64], strides = [1, 1]} : vector<1x256xf32> to vector<1x64xf32>
    %201 = arith.negf %200 : vector<1x64xf32>
    %202 = math.exp %201 : vector<1x64xf32>
    %cst_45 = arith.constant 1.000000e+00 : f32
    %203 = vector.broadcast %cst_45 : f32 to vector<1x64xf32>
    %204 = arith.addf %203, %202 : vector<1x64xf32>
    %205 = arith.divf %203, %204 : vector<1x64xf32>
    %206 = arith.mulf %191, %179 : vector<1x64xf32>
    %207 = arith.mulf %197, %199 : vector<1x64xf32>
    %208 = arith.addf %206, %207 : vector<1x64xf32>
    %209 = math.tanh %208 : vector<1x64xf32>
    %210 = arith.mulf %205, %209 : vector<1x64xf32>
    %c6 = arith.constant 6 : index
    %c0_46 = arith.constant 0 : index
    %211 = vector.load %arg6[%c6, %c0_46] : memref<8x64xf32, #tpu.memory_space<vmem>>, vector<1x64xf32>
    tpu.vector_store %arg6[%c6, %c0_46], %210 {strides = array<i32>} : memref<8x64xf32, #tpu.memory_space<vmem>>, vector<1x64xf32>,
    %212 = vector.extract_strided_slice %5 {offsets = [7, 0], sizes = [1, 256], strides = [1, 1]} : vector<8x256xf32> to vector<1x256xf32>
    %cst_47 = arith.constant dense<0.000000e+00> : vector<1x256xf32>
    %213 = tpu.matmul %210, %6, %cst_47 {dimension_numbers = #tpu.dot_dimension_numbers<[1], [0], [0], [1], [0, 0, 1, 1], [], []>} : vector<1x64xf32>, vector<64x256xf32>, vector<1x256xf32> -> vector<1x256xf32>
    %214 = arith.addf %212, %213 : vector<1x256xf32>
    %215 = vector.extract_strided_slice %214 {offsets = [0, 0], sizes = [1, 64], strides = [1, 1]} : vector<1x256xf32> to vector<1x64xf32>
    %216 = arith.negf %215 : vector<1x64xf32>
    %217 = math.exp %216 : vector<1x64xf32>
    %cst_48 = arith.constant 1.000000e+00 : f32
    %218 = vector.broadcast %cst_48 : f32 to vector<1x64xf32>
    %219 = arith.addf %218, %217 : vector<1x64xf32>
    %220 = arith.divf %218, %219 : vector<1x64xf32>
    %221 = vector.extract_strided_slice %214 {offsets = [0, 64], sizes = [1, 64], strides = [1, 1]} : vector<1x256xf32> to vector<1x64xf32>
    %222 = arith.negf %221 : vector<1x64xf32>
    %223 = math.exp %222 : vector<1x64xf32>
    %cst_49 = arith.constant 1.000000e+00 : f32
    %224 = vector.broadcast %cst_49 : f32 to vector<1x64xf32>
    %225 = arith.addf %224, %223 : vector<1x64xf32>
    %226 = arith.divf %224, %225 : vector<1x64xf32>
    %227 = vector.extract_strided_slice %214 {offsets = [0, 128], sizes = [1, 64], strides = [1, 1]} : vector<1x256xf32> to vector<1x64xf32>
    %228 = math.tanh %227 : vector<1x64xf32>
    %229 = vector.extract_strided_slice %214 {offsets = [0, 192], sizes = [1, 64], strides = [1, 1]} : vector<1x256xf32> to vector<1x64xf32>
    %230 = arith.negf %229 : vector<1x64xf32>
    %231 = math.exp %230 : vector<1x64xf32>
    %cst_50 = arith.constant 1.000000e+00 : f32
    %232 = vector.broadcast %cst_50 : f32 to vector<1x64xf32>
    %233 = arith.addf %232, %231 : vector<1x64xf32>
    %234 = arith.divf %232, %233 : vector<1x64xf32>
    %235 = arith.mulf %220, %208 : vector<1x64xf32>
    %236 = arith.mulf %226, %228 : vector<1x64xf32>
    %237 = arith.addf %235, %236 : vector<1x64xf32>
    %238 = math.tanh %237 : vector<1x64xf32>
    %239 = arith.mulf %234, %238 : vector<1x64xf32>
    %c7 = arith.constant 7 : index
    %c0_51 = arith.constant 0 : index
    %240 = vector.load %arg6[%c7, %c0_51] : memref<8x64xf32, #tpu.memory_space<vmem>>, vector<1x64xf32>
    tpu.vector_store %arg6[%c7, %c0_51], %239 {strides = array<i32>} : memref<8x64xf32, #tpu.memory_space<vmem>>, vector<1x64xf32>,
    return
  }
}

</mosaic_0001>

<bundles_post_ra>
// kernel: tpu_custom_call.1
= control target key start
LH: loop header
LB: loop body
LE: loop exit
PB: predicated region body
PF: predicated region fallthrough
CT: control target
= control target key end

     0   :  { %11 = vsyncpa [#allocation3], 0  ;;  %s1816_s0 = inlined_call_operand.hbm [shape: f32[8,64], index: 0, kind: input, shape index: {}]   ;;  %s1817_s1 = inlined_call_operand.hbm [shape: f32[64,256], index: 1, kind: input, shape index: {}]   ;;  %s1818_s2 = inlined_call_operand.hbm [shape: f32[64,256], index: 2, kind: input, shape index: {}]   ;;  %s1819_s3 = inlined_call_operand.vmem [shape: f32[1,256], index: 3, kind: input, shape index: {}]   ;;  %s1820_s4 = inlined_call_operand.vmem [shape: f32[1,64], index: 4, kind: input, shape index: {}]   ;;  %s1821_s5 = inlined_call_operand.vmem [shape: f32[1,64], index: 5, kind: input, shape index: {}]   ;;  %s1822_s6 = inlined_call_operand.hbm [shape: f32[8,64], index: 6, kind: output, shape index: {}]  }
   0x1   :  { %12 = vsyncpa [#allocation6], 0 }
   0x2   :  { %13 = vsyncpa [#allocation4], 0  ;;  %s1538_s21 = smov [#allocation5]   ;;  %s1444_s25 = scalar_lea.hbm %s1817_s1, 2048 }
   0x3   :  { %s29_s22 = sshll.u32 %s1538_s21, 4  ;;  %p1445_p0 = scmp.ne.s32.totalorder %s1817_s1, %s1444_s25  ;;  %s30_s22 = int_to_ptr.vmem [resolvable:$true] %s29_s22 }
   0x4   :  { %p1448_p1 = scmp.lt.u32.totalorder %s1444_s25, %s1817_s1 }
   0x6   :  { %p1450_p2 = pnand %p1448_p1, %p1445_p0 }
   0x8   :  { %1453 = shalt.err (!%p1450_p2)
}
   0x9   :  { %s1454_s30 = scalar_lea.vmem %s30_s22, 2048  ;;  %p1459_p4 = scmp.lt.s32.totalorder %s30_s22, %s30_s22 }
   0xa   :  { %p1455_p3 = scmp.ne.s32.totalorder %s30_s22, %s1454_s30  ;;  %p1460_p5 = scmp.lt.s32.totalorder %s1454_s30, %s1454_s30 }
   0xc   :  { %p1461_p6 = por %p1460_p5, %p1459_p4 }
   0xe   :  { %p1462_p7 = pnand %p1461_p6, %p1455_p3 }
  0x10   :  { %1465 = shalt.err (!%p1462_p7)
}
  0x11   :  { %s1539_s7 = smov 256   ;;  %s1540_s8 = smov 16  }
  0x12   :  { %35 = dma.hbm_to_vmem [thread:$0]  %s1817_s1, 2048, %s30_s22, [#allocation6], %s1539_s7, %s1539_s7, %s1540_s8  }
  0x13   :  { %s1541_s11 = smov [#allocation2]   ;;  %s1542_s13 = smov [#allocation7]  }
  0x14   :  { %s20_s12 = sshll.u32 %s1541_s11, 4  ;;  %s41_s14 = sshll.u32 %s1542_s13, 4  ;;  %s21_s12 = int_to_ptr.vmem [resolvable:$true] %s20_s12  ;;  %s42_s14 = int_to_ptr.vmem [resolvable:$true] %s41_s14 }
  0x15   :  { %s1466_s17 = scalar_lea.hbm %s1816_s0, 128 }
  0x16   :  { %p1467_p8 = scmp.ne.s32.totalorder %s1816_s0, %s1466_s17  ;;  %p1470_p9 = scmp.lt.u32.totalorder %s1466_s17, %s1816_s0 }
  0x18   :  { %p1472_p10 = pnand %p1470_p9, %p1467_p8 }
  0x1a   :  { %1475 = shalt.err (!%p1472_p10)
}
  0x1b   :  { %s1476_s1 = scalar_lea.vmem %s21_s12, 128  ;;  %p1481_p12 = scmp.lt.s32.totalorder %s21_s12, %s21_s12 }
  0x1c   :  { %p1477_p11 = scmp.ne.s32.totalorder %s21_s12, %s1476_s1  ;;  %p1482_p13 = scmp.lt.s32.totalorder %s1476_s1, %s1476_s1 }
  0x1e   :  { %p1483_p0 = por %p1482_p13, %p1481_p12 }
  0x20   :  { %p1484_p1 = pnand %p1483_p0, %p1477_p11 }
  0x22   :  { %1487 = shalt.err (!%p1484_p1)
}
  0x23   :  { %23 = dma.hbm_to_vmem [thread:$0]  %s1816_s0, 128, %s21_s12, [#allocation3]  }
  0x24   :  { %s1488_s26 = scalar_lea.hbm %s1818_s2, 2048 }
  0x25   :  { %p1489_p2 = scmp.ne.s32.totalorder %s1818_s2, %s1488_s26  ;;  %p1492_p3 = scmp.lt.u32.totalorder %s1488_s26, %s1818_s2 }
  0x27   :  { %p1494_p4 = pnand %p1492_p3, %p1489_p2 }
  0x29   :  { %1497 = shalt.err (!%p1494_p4)
}
  0x2a   :  { %s1498_s9 = scalar_lea.vmem %s42_s14, 2048  ;;  %p1503_p6 = scmp.lt.s32.totalorder %s42_s14, %s42_s14 }
  0x2b   :  { %p1499_p5 = scmp.ne.s32.totalorder %s42_s14, %s1498_s9  ;;  %p1504_p7 = scmp.lt.s32.totalorder %s1498_s9, %s1498_s9 }
  0x2d   :  { %p1505_p8 = por %p1504_p7, %p1503_p6 }
  0x2f   :  { %p1506_p9 = pnand %p1505_p8, %p1499_p5 }
  0x31   :  { %1509 = shalt.err (!%p1506_p9)
}
  0x32   :  { %47 = dma.hbm_to_vmem [thread:$0]  %s1818_s2, 2048, %s42_s14, [#allocation6], %s1539_s7, %s1539_s7, %s1540_s8  }
  0x33   :  { %1532 = dma.done.wait [#allocation3], 128  }
  0x34   :  { %1533 = vsyncadd [#allocation3], 4294967168 }
  0x35   :  { %1534 = dma.done.wait [#allocation6], 4096  }
  0x36   :  { %1535 = vsyncadd [#allocation6], 4294963200  ;;  %v1543_v0 = vmov 0.0   ;;  %v65_v1 = vld [vmem:[#allocation5 + $0x8] sm:$0xff]  ;;  %v67_v2 = vld [vmem:[#allocation5 + $0x18] sm:$0xff]  ;;  %vm92_vm0 = vcmask 523264   ;;  %v82_v51 = vlaneseq }
  0x37   :  { %160 = vmatprep.mubr.f32.mxu0 %v1543_v0  ;;  %252 = vmatprep.mubr.f32.mxu1 %v1543_v0  ;;  %v64_v3 = vld [vmem:[#allocation5] sm:$0xff]  ;;  %v1196_v4 = vpack.c.bf16 %v67_v2, %v65_v1  ;;  %v66_v5 = vld [vmem:[#allocation5 + $0x10] sm:$0xff]  ;;  %v168_v6 = vld [vmem:[#allocation7 + $0x8] sm:$0xff]  ;;  %s1544_s11 = smov 64   ;;  %vm295_vm1 = vcmask 516096   ;;  %vm415_vm2 = vcmask 517121  }
  0x38   :  { %v170_v7 = vld [vmem:[#allocation7 + $0x18] sm:$0xff]  ;;  %v1198_v8 = vpack.c.bf16 %v66_v5, %v64_v3  ;;  %v167_v10 = vld [vmem:[#allocation7] sm:$0xff]  ;;  %v169_v11 = vld [vmem:[#allocation7 + $0x10] sm:$0xff]  ;;  %v83_v52 = vshrl.u32 %v82_v51, 7  ;;  %vm661_vm3 = vcmask 519171   ;;  %vm907_vm4 = vcmask 521221  }
  0x39   :  { %v1625_v9 = vpack.c.bf16 %v170_v7, %v168_v6  ;;  %v69_v12 = vld [vmem:[#allocation5 + $0x28] sm:$0xff]  ;;  %1197 = vmatprep.subr.bf16.mxu0 %v1196_v4  ;;  %v1627_v13 = vpack.c.bf16 %v169_v11, %v167_v10  ;;  %v71_v14 = vld [vmem:[#allocation5 + $0x38] sm:$0xff]  ;;  %v68_v15 = vld [vmem:[#allocation5 + $0x20] sm:$0xff]  ;;  %vm538_vm5 = vcmask 518146   ;;  %vm784_vm6 = vcmask 520196  }
  0x3a   :  { %v70_v16 = vld [vmem:[#allocation5 + $0x30] sm:$0xff]  ;;  %1199 = vmatpush1.bf16.msra.mxu0 %v1198_v8  ;;  %v1200_v17 = vpack.c.bf16 %v71_v14, %v69_v12  ;;  %v172_v19 = vld [vmem:[#allocation7 + $0x28] sm:$0xff]  ;;  %v174_v20 = vld [vmem:[#allocation7 + $0x38] sm:$0xff]  ;;  %v88_v53 = vsub.s32 1, %v83_v52  ;;  %v84_v63 = vsub.s32 0, %v83_v52  ;;  %vm1030_vm7 = vcmask 522246  }
  0x3b   :  { %1213 = vmatprep.subr.bf16.mxu1 %v1625_v9  ;;  %v1202_v18 = vpack.c.bf16 %v70_v16, %v68_v15  ;;  %v171_v21 = vld [vmem:[#allocation7 + $0x20] sm:$0xff]  ;;  %v1631_v22 = vpack.c.bf16 %v174_v20, %v172_v19  ;;  %v173_v23 = vld [vmem:[#allocation7 + $0x30] sm:$0xff]  ;;  %v73_v24 = vld [vmem:[#allocation5 + $0x48] sm:$0xff]  ;;  %vm1153_vm8 = vcmask 523271  }
  0x3c   :  { %1215 = vmatpush1.bf16.msra.mxu1 %v1627_v13  ;;  %v75_v25 = vld [vmem:[#allocation5 + $0x58] sm:$0xff]  ;;  %1201 = vmatprep.subr.bf16.mxu0 %v1200_v17  ;;  %v1633_v26 = vpack.c.bf16 %v173_v23, %v171_v21  ;;  %v72_v28 = vld [vmem:[#allocation5 + $0x40] sm:$0xff]  ;;  %v74_v29 = vld [vmem:[#allocation5 + $0x50] sm:$0xff] }
  0x3d   :  { %v1204_v27 = vpack.c.bf16 %v75_v25, %v73_v24  ;;  %v176_v30 = vld [vmem:[#allocation7 + $0x48] sm:$0xff]  ;;  %1217 = vmatprep.subr.bf16.mxu1 %v1631_v22  ;;  %v178_v31 = vld [vmem:[#allocation7 + $0x58] sm:$0xff]  ;;  %v175_v32 = vld [vmem:[#allocation7 + $0x40] sm:$0xff]  ;;  %v1206_v34 = vpack.c.bf16 %v74_v29, %v72_v28 }
  0x3e   :  { %v177_v33 = vld [vmem:[#allocation7 + $0x50] sm:$0xff]  ;;  %1203 = vmatpush1.bf16.msra.mxu0 %v1202_v18  ;;  %v1636_v35 = vpack.c.bf16 %v178_v31, %v176_v30  ;;  %v77_v36 = vld [vmem:[#allocation5 + $0x68] sm:$0xff]  ;;  %v79_v37 = vld [vmem:[#allocation5 + $0x78] sm:$0xff] }
  0x3f   :  { %v76_v38 = vld [vmem:[#allocation5 + $0x60] sm:$0xff]  ;;  %1205 = vmatprep.subr.bf16.mxu0 %v1204_v27  ;;  %v1639_v39 = vpack.c.bf16 %v177_v33, %v175_v32  ;;  %v1208_v40 = vpack.c.bf16 %v79_v37, %v77_v36  ;;  %v78_v41 = vld [vmem:[#allocation5 + $0x70] sm:$0xff]  ;;  %v180_v42 = vld [vmem:[#allocation7 + $0x68] sm:$0xff] }
  0x40   :  { %1219 = vmatpush1.bf16.msra.mxu1 %v1633_v26  ;;  %v182_v43 = vld [vmem:[#allocation7 + $0x78] sm:$0xff]  ;;  %v179_v45 = vld [vmem:[#allocation7 + $0x60] sm:$0xff]  ;;  %v181_v46 = vld [vmem:[#allocation7 + $0x70] sm:$0xff]  ;;  %v1210_v47 = vpack.c.bf16 %v78_v41, %v76_v38 }
  0x41   :  { %1221 = vmatprep.subr.bf16.mxu1 %v1636_v35  ;;  %v1642_v44 = vpack.c.bf16 %v182_v43, %v180_v42  ;;  %v1645_v48 = vpack.c.bf16 %v181_v46, %v179_v45  ;;  %v63_v49 = vld [vmem:[#allocation2] sm:$0xff] }
  0x42   :  { %1207 = vmatpush1.bf16.msra.mxu0 %v1206_v34  ;;  %v183_v50 = vld [vmem:[%s1820_s4] sm:$0x1] }
  0x43   :  { %1209 = vmatprep.subr.bf16.mxu0 %v1208_v40  ;;  %v80_v54 = vld [vmem:[%s1819_s3] sm:$0x3] }
  0x44   :  { %1223 = vmatpush1.bf16.msra.mxu1 %v1639_v39  ;;  %v89_v55 = vrot.slane %v80_v54, %v88_v53  ;;  %v85_v1 = vrot.slane %v80_v54, %v84_v63  ;;  %v184_v11 = vld [vmem:[%s1821_s5] sm:$0x1]  ;;  %s1545_s5 = smov [#allocation8]  }
  0x45   :  { %1225 = vmatprep.subr.bf16.mxu1 %v1642_v44  ;;  %s1161_s13 = sshll.u32 %s1545_s5, 4  ;;  %s1162_s13 = int_to_ptr.vmem [resolvable:$true] %s1161_s13 }
  0x46   :  { %1211 = vmatpush1.bf16.msra.mxu0 %v1210_v47  ;;  %s1510_s14 = scalar_lea.vmem %s1162_s13, 128  ;;  %p1515_p11 = scmp.lt.s32.totalorder %s1162_s13, %s1162_s13 }
  0x47   :  { %1229 = vmatprep.subr.bf16.mxu0 %v1625_v9  ;;  %p1511_p10 = scmp.ne.s32.totalorder %s1162_s13, %s1510_s14  ;;  %p1516_p12 = scmp.lt.s32.totalorder %s1510_s14, %s1510_s14 }
  0x48   :  { %1227 = vmatpush1.bf16.msra.mxu1 %v1645_v48 }
  0x49   :  { %1245 = vmatprep.subr.bf16.mxu1 %v1625_v9  ;;  %1171 = vmatmul.mubr.msk.f32.vlgmr.msra.gmra.mrb[0].mxu0 %vm92_vm0, %v63_v49  ;;  %p1517_p13 = por %p1516_p12, %p1515_p11 }
  0x4a   :  { %1231 = vmatpush1.bf16.msra.mxu0 %v1627_v13  ;;  %363 = vmatprep.mubr.f32.mxu0 %v1543_v0 }
  0x4b   :  { %1172 = vmatmul.mubr.msk.f32.vlgmr.msra.gmra.mrb[0].mxu1 %vm92_vm0, %v183_v50  ;;  %1233 = vmatprep.subr.bf16.mxu0 %v1631_v22  ;;  %p1518_p0 = pnand %p1517_p13, %p1511_p10 }
  0x4c   :  { %1247 = vmatpush1.bf16.msra.mxu1 %v1627_v13  ;;  %486 = vmatprep.mubr.f32.mxu1 %v1543_v0 }
  0x4d   :  { %1249 = vmatprep.subr.bf16.mxu1 %v1631_v22 }
  0x4e   :  { %1235 = vmatpush1.bf16.msra.mxu0 %v1633_v26 }
  0x4f   :  { %1237 = vmatprep.subr.bf16.mxu0 %v1636_v35 }
  0x50   :  { %1251 = vmatpush1.bf16.msra.mxu1 %v1633_v26 }
  0x51   :  { %1253 = vmatprep.subr.bf16.mxu1 %v1636_v35 }
  0x52   :  { %1239 = vmatpush1.bf16.msra.mxu0 %v1639_v39 }
  0x53   :  { %1241 = vmatprep.subr.bf16.mxu0 %v1642_v44 }
  0x54   :  { %1255 = vmatpush1.bf16.msra.mxu1 %v1639_v39 }
  0x55   :  { %1257 = vmatprep.subr.bf16.mxu1 %v1642_v44 }
  0x56   :  { %1243 = vmatpush1.bf16.msra.mxu0 %v1645_v48 }
  0x57   :  { %1261 = vmatprep.subr.bf16.mxu0 %v1625_v9 }
  0x58   :  { %1259 = vmatpush1.bf16.msra.mxu1 %v1645_v48 }
  0x59   :  { %1277 = vmatprep.subr.bf16.mxu1 %v1625_v9 }
 0x11c   :  { %v162_v56 = vpop.f32.mrb[0].mxu0 }
 0x11d   :  { %v164_v57 = vpop.f32.mrb[1].mxu0  ;;  %v1681_v2 = vadd.f32 %v162_v56, %v85_v1 }
 0x11e   :  { %v254_v58 = vpop.f32.mrb[0].mxu1  ;;  %v1677_v59 = vadd.f32 %v164_v57, %v89_v55 }
 0x11f   :  { %v256_v60 = vpop.f32.mrb[1].mxu1  ;;  %v259_v3 = vadd.f32 %v254_v58, %v1681_v2 }
 0x120   :  { %v260_v61 = vadd.f32 %v256_v60, %v1677_v59 }
 0x121   :  { %v1173_v4 = vmul.f32 -1.442695, %v259_v3 }
 0x122   :  { %1348 = vtanh.f32 %v260_v61  ;;  %v1174_v17 = vmul.f32 -1.442695, %v260_v61 }
 0x123   :  { %1350 = vpow2.f32 %v1173_v4 }
 0x12c   :  { %v1349_v62 = vpop.eup %1348 }
 0x12d   :  { %276 = vrot.lane.b32.xlu0 %v1349_v62, %s1544_s11  ;;  %v1351_v5 = vpop.eup %1350 }
 0x12e   :  { %v264_v6 = vadd.f32 1.0, %v1351_v5 }
 0x130   :  { %1352 = vrcp.f32 %v264_v6 }
 0x13a   :  { %v1353_v7 = vpop.eup %1352 }
 0x13b   :  { %v274_v12 = vmul.f32 %v1353_v7, %v184_v11 }
 0x19f   :  { %v277_v8 = vpop.permute.xlu0 %276 }
 0x1a0   :  { %v279_v10 = vmul.f32 %v1353_v7, %v277_v8 }
 0x1a2   :  { %281 = vrot.lane.b32.xlu0 %v279_v10, %s1544_s11 }
 0x214   :  { %v282_v14 = vpop.permute.xlu0 %281 }
 0x215   :  { %v284_v15 = vadd.f32 %v282_v14, %v274_v12 }
 0x217   :  { %1354 = vtanh.f32 %v284_v15  ;;  %v392_v41 = vrot.slane %v284_v15, 7 }
 0x218   :  { %1356 = vpow2.f32 %v1174_v17 }
 0x221   :  { %v1355_v16 = vpop.eup %1354 }
 0x222   :  { %287 = vrot.lane.b32.xlu1 %v1355_v16, %s1544_s11  ;;  %v1357_v18 = vpop.eup %1356 }
 0x223   :  { %v271_v19 = vadd.f32 1.0, %v1357_v18 }
 0x225   :  { %1358 = vrcp.f32 %v271_v19 }
 0x22f   :  { %v1359_v20 = vpop.eup %1358 }
 0x294   :  { %v288_v21 = vpop.permute.xlu1 %287 }
 0x295   :  { %v290_v23 = vmul.f32 %v1359_v20, %v288_v21 }
 0x297   :  { %292 = vrot.lane.b32.xlu1 %v290_v23, %s1544_s11 }
 0x309   :  { %v293_v24 = vpop.permute.xlu1 %292 }
 0x30a   :  { %296 = vst.msk [vmem:[#allocation8] sm:$0x1] %vm295_vm1, %v293_v24  ;;  %1175 = vmatmul.mubr.msk.f32.vlgmr.msra.gmra.mrb[2].mxu0 %vm92_vm0, %v293_v24 }
 0x30b   :  { %1263 = vmatpush1.bf16.msra.mxu0 %v1627_v13  ;;  %609 = vmatprep.mubr.f32.mxu0 %v1543_v0 }
 0x30c   :  { %1265 = vmatprep.subr.bf16.mxu0 %v1631_v22 }
 0x30f   :  { %1267 = vmatpush1.bf16.msra.mxu0 %v1633_v26 }
 0x310   :  { %1269 = vmatprep.subr.bf16.mxu0 %v1636_v35 }
 0x313   :  { %1271 = vmatpush1.bf16.msra.mxu0 %v1639_v39 }
 0x314   :  { %1273 = vmatprep.subr.bf16.mxu0 %v1642_v44 }
 0x317   :  { %1275 = vmatpush1.bf16.msra.mxu0 %v1645_v48 }
 0x318   :  { %1293 = vmatprep.subr.bf16.mxu0 %v1625_v9 }
 0x3dd   :  { %v365_v25 = vpop.f32.mrb[2].mxu0 }
 0x3de   :  { %v367_v27 = vpop.f32.mrb[3].mxu0  ;;  %v372_v31 = vrot.slane %v365_v25, 7 }
 0x3df   :  { %v373_v28 = vrot.slane %v367_v27, 7 }
 0x3e0   :  { %v376_v32 = vadd.f32 %v372_v31, %v1681_v2 }
 0x3e1   :  { %v377_v29 = vadd.f32 %v373_v28, %v1677_v59 }
 0x3e2   :  { %v1176_v33 = vmul.f32 -1.442695, %v376_v32 }
 0x3e3   :  { %1360 = vtanh.f32 %v377_v29  ;;  %v1177_v47 = vmul.f32 -1.442695, %v377_v29 }
 0x3e4   :  { %1362 = vpow2.f32 %v1176_v33 }
 0x3ed   :  { %v1361_v30 = vpop.eup %1360 }
 0x3ee   :  { %396 = vrot.lane.b32.xlu0 %v1361_v30, %s1544_s11  ;;  %v1363_v34 = vpop.eup %1362 }
 0x3ef   :  { %v381_v36 = vadd.f32 1.0, %v1363_v34 }
 0x3f1   :  { %1364 = vrcp.f32 %v381_v36 }
 0x3fb   :  { %v1365_v37 = vpop.eup %1364 }
 0x3fc   :  { %v394_v42 = vmul.f32 %v1365_v37, %v392_v41 }
 0x460   :  { %v397_v38 = vpop.permute.xlu0 %396 }
 0x461   :  { %v399_v40 = vmul.f32 %v1365_v37, %v397_v38 }
 0x463   :  { %401 = vrot.lane.b32.xlu1 %v399_v40, %s1544_s11 }
 0x4d5   :  { %v402_v43 = vpop.permute.xlu1 %401 }
 0x4d6   :  { %v404_v45 = vadd.f32 %v402_v43, %v394_v42 }
 0x4d8   :  { %1366 = vtanh.f32 %v404_v45  ;;  %v515_v8 = vrot.slane %v404_v45, 7 }
 0x4d9   :  { %1368 = vpow2.f32 %v1177_v47 }
 0x4e2   :  { %v1367_v46 = vpop.eup %1366 }
 0x4e3   :  { %407 = vrot.lane.b32.xlu0 %v1367_v46, %s1544_s11  ;;  %v1369_v49 = vpop.eup %1368 }
 0x4e4   :  { %v388_v50 = vadd.f32 1.0, %v1369_v49 }
 0x4e6   :  { %1370 = vrcp.f32 %v388_v50 }
 0x4f0   :  { %v1371_v51 = vpop.eup %1370 }
 0x555   :  { %v408_v52 = vpop.permute.xlu0 %407 }
 0x556   :  { %v1705_v53 = vmul.f32 %v1371_v51, %v408_v52 }
 0x558   :  { %v417_v54 = vrot.slane %v1705_v53, 1 }
 0x55a   :  { %418 = vrot.lane.b32.xlu1 %v417_v54, %s1544_s11 }
 0x5cc   :  { %v419_v55 = vpop.permute.xlu1 %418 }
 0x5cd   :  { %1178 = vmatmul.mubr.msk.f32.vlgmr.msra.gmra.mrb[2].mxu1 %vm92_vm0, %v419_v55 }
 0x5ce   :  { %1279 = vmatpush1.bf16.msra.mxu1 %v1627_v13  ;;  %732 = vmatprep.mubr.f32.mxu1 %v1543_v0 }
 0x5cf   :  { %1281 = vmatprep.subr.bf16.mxu1 %v1631_v22 }
 0x5d2   :  { %1283 = vmatpush1.bf16.msra.mxu1 %v1633_v26 }
 0x5d3   :  { %1285 = vmatprep.subr.bf16.mxu1 %v1636_v35 }
 0x5d6   :  { %1287 = vmatpush1.bf16.msra.mxu1 %v1639_v39 }
 0x5d7   :  { %1289 = vmatprep.subr.bf16.mxu1 %v1642_v44 }
 0x5da   :  { %1291 = vmatpush1.bf16.msra.mxu1 %v1645_v48 }
 0x5db   :  { %1309 = vmatprep.subr.bf16.mxu1 %v1625_v9 }
 0x6a0   :  { %v488_v56 = vpop.f32.mrb[2].mxu1 }
 0x6a1   :  { %v490_v57 = vpop.f32.mrb[3].mxu1  ;;  %v495_v62 = vrot.slane %v488_v56, 6 }
 0x6a2   :  { %v496_v58 = vrot.slane %v490_v57, 6 }
 0x6a3   :  { %v499_v63 = vadd.f32 %v495_v62, %v1681_v2 }
 0x6a4   :  { %v500_v60 = vadd.f32 %v496_v58, %v1677_v59 }
 0x6a5   :  { %v1179_v1 = vmul.f32 -1.442695, %v499_v63 }
 0x6a6   :  { %1372 = vtanh.f32 %v500_v60  ;;  %v1180_v15 = vmul.f32 -1.442695, %v500_v60 }
 0x6a7   :  { %1374 = vpow2.f32 %v1179_v1 }
 0x6b0   :  { %v1373_v61 = vpop.eup %1372 }
 0x6b1   :  { %519 = vrot.lane.b32.xlu0 %v1373_v61, %s1544_s11  ;;  %v1375_v3 = vpop.eup %1374 }
 0x6b2   :  { %v504_v4 = vadd.f32 1.0, %v1375_v3 }
 0x6b4   :  { %1376 = vrcp.f32 %v504_v4 }
 0x6be   :  { %v1377_v5 = vpop.eup %1376 }
 0x6bf   :  { %v517_v10 = vmul.f32 %v1377_v5, %v515_v8 }
 0x723   :  { %v520_v6 = vpop.permute.xlu0 %519 }
 0x724   :  { %v522_v7 = vmul.f32 %v1377_v5, %v520_v6 }
 0x726   :  { %524 = vrot.lane.b32.xlu1 %v522_v7, %s1544_s11 }
 0x798   :  { %v525_v11 = vpop.permute.xlu1 %524 }
 0x799   :  { %v527_v12 = vadd.f32 %v525_v11, %v517_v10 }
 0x79b   :  { %1378 = vtanh.f32 %v527_v12  ;;  %v638_v38 = vrot.slane %v527_v12, 7 }
 0x79c   :  { %1380 = vpow2.f32 %v1180_v15 }
 0x7a5   :  { %v1379_v14 = vpop.eup %1378 }
 0x7a6   :  { %530 = vrot.lane.b32.xlu0 %v1379_v14, %s1544_s11  ;;  %v1381_v16 = vpop.eup %1380 }
 0x7a7   :  { %v511_v17 = vadd.f32 1.0, %v1381_v16 }
 0x7a9   :  { %1382 = vrcp.f32 %v511_v17 }
 0x7b3   :  { %v1383_v18 = vpop.eup %1382 }
 0x818   :  { %v531_v19 = vpop.permute.xlu0 %530 }
 0x819   :  { %v1724_v20 = vmul.f32 %v1383_v18, %v531_v19 }
 0x81b   :  { %v540_v21 = vrot.slane %v1724_v20, 2 }
 0x81d   :  { %541 = vrot.lane.b32.xlu1 %v540_v21, %s1544_s11 }
 0x88f   :  { %v542_v23 = vpop.permute.xlu1 %541 }
 0x890   :  { %1181 = vmatmul.mubr.msk.f32.vlgmr.msra.gmra.mrb[4].mxu0 %vm92_vm0, %v542_v23 }
 0x891   :  { %1295 = vmatpush1.bf16.msra.mxu0 %v1627_v13  ;;  %855 = vmatprep.mubr.f32.mxu0 %v1543_v0 }
 0x892   :  { %1297 = vmatprep.subr.bf16.mxu0 %v1631_v22 }
 0x895   :  { %1299 = vmatpush1.bf16.msra.mxu0 %v1633_v26 }
 0x896   :  { %1301 = vmatprep.subr.bf16.mxu0 %v1636_v35 }
 0x899   :  { %1303 = vmatpush1.bf16.msra.mxu0 %v1639_v39 }
 0x89a   :  { %1305 = vmatprep.subr.bf16.mxu0 %v1642_v44 }
 0x89d   :  { %1307 = vmatpush1.bf16.msra.mxu0 %v1645_v48 }
 0x89e   :  { %1325 = vmatprep.subr.bf16.mxu0 %v1625_v9 }
 0x963   :  { %v611_v24 = vpop.f32.mrb[4].mxu0 }
 0x964   :  { %v613_v25 = vpop.f32.mrb[5].mxu0  ;;  %v618_v30 = vrot.slane %v611_v24, 5 }
 0x965   :  { %v619_v27 = vrot.slane %v613_v25, 5 }
 0x966   :  { %v622_v31 = vadd.f32 %v618_v30, %v1681_v2 }
 0x967   :  { %v623_v28 = vadd.f32 %v619_v27, %v1677_v59 }
 0x968   :  { %v1182_v32 = vmul.f32 -1.442695, %v622_v31 }
 0x969   :  { %1384 = vtanh.f32 %v623_v28  ;;  %v1183_v45 = vmul.f32 -1.442695, %v623_v28 }
 0x96a   :  { %1386 = vpow2.f32 %v1182_v32 }
 0x973   :  { %v1385_v29 = vpop.eup %1384 }
 0x974   :  { %642 = vrot.lane.b32.xlu0 %v1385_v29, %s1544_s11  ;;  %v1387_v33 = vpop.eup %1386 }
 0x975   :  { %v627_v34 = vadd.f32 1.0, %v1387_v33 }
 0x977   :  { %1388 = vrcp.f32 %v627_v34 }
 0x981   :  { %v1389_v36 = vpop.eup %1388 }
 0x982   :  { %v640_v40 = vmul.f32 %v1389_v36, %v638_v38 }
 0x9e6   :  { %v643_v37 = vpop.permute.xlu0 %642 }
 0x9e7   :  { %v645_v9 = vmul.f32 %v1389_v36, %v643_v37 }
 0x9e9   :  { %647 = vrot.lane.b32.xlu1 %v645_v9, %s1544_s11 }
 0xa5b   :  { %v648_v41 = vpop.permute.xlu1 %647 }
 0xa5c   :  { %v650_v42 = vadd.f32 %v648_v41, %v640_v40 }
 0xa5e   :  { %1390 = vtanh.f32 %v650_v42  ;;  %v761_v7 = vrot.slane %v650_v42, 7 }
 0xa5f   :  { %1392 = vpow2.f32 %v1183_v45 }
 0xa68   :  { %v1391_v43 = vpop.eup %1390 }
 0xa69   :  { %653 = vrot.lane.b32.xlu0 %v1391_v43, %s1544_s11  ;;  %v1393_v46 = vpop.eup %1392 }
 0xa6a   :  { %v634_v47 = vadd.f32 1.0, %v1393_v46 }
 0xa6c   :  { %1394 = vrcp.f32 %v634_v47 }
 0xa76   :  { %v1395_v49 = vpop.eup %1394 }
 0xadb   :  { %v654_v50 = vpop.permute.xlu0 %653 }
 0xadc   :  { %v1743_v51 = vmul.f32 %v1395_v49, %v654_v50 }
 0xade   :  { %v663_v52 = vrot.slane %v1743_v51, 3 }
 0xae0   :  { %664 = vrot.lane.b32.xlu1 %v663_v52, %s1544_s11 }
 0xb52   :  { %v665_v54 = vpop.permute.xlu1 %664 }
 0xb53   :  { %1184 = vmatmul.mubr.msk.f32.vlgmr.msra.gmra.mrb[4].mxu1 %vm92_vm0, %v665_v54 }
 0xb54   :  { %1311 = vmatpush1.bf16.msra.mxu1 %v1627_v13  ;;  %978 = vmatprep.mubr.f32.mxu1 %v1543_v0 }
 0xb55   :  { %1313 = vmatprep.subr.bf16.mxu1 %v1631_v22 }
 0xb58   :  { %1315 = vmatpush1.bf16.msra.mxu1 %v1633_v26 }
 0xb59   :  { %1317 = vmatprep.subr.bf16.mxu1 %v1636_v35 }
 0xb5c   :  { %1319 = vmatpush1.bf16.msra.mxu1 %v1639_v39 }
 0xb5d   :  { %1321 = vmatprep.subr.bf16.mxu1 %v1642_v44 }
 0xb60   :  { %1323 = vmatpush1.bf16.msra.mxu1 %v1645_v48 }
 0xc26   :  { %v734_v55 = vpop.f32.mrb[4].mxu1 }
 0xc27   :  { %v736_v56 = vpop.f32.mrb[5].mxu1  ;;  %v741_v61 = vrot.slane %v734_v55, 4 }
 0xc28   :  { %v742_v57 = vrot.slane %v736_v56, 4 }
 0xc29   :  { %v745_v62 = vadd.f32 %v741_v61, %v1681_v2 }
 0xc2a   :  { %v746_v58 = vadd.f32 %v742_v57, %v1677_v59 }
 0xc2b   :  { %v1185_v63 = vmul.f32 -1.442695, %v745_v62 }
 0xc2c   :  { %1396 = vtanh.f32 %v746_v58  ;;  %v1186_v14 = vmul.f32 -1.442695, %v746_v58 }
 0xc2d   :  { %1398 = vpow2.f32 %v1185_v63 }
 0xc36   :  { %v1397_v60 = vpop.eup %1396 }
 0xc37   :  { %765 = vrot.lane.b32.xlu0 %v1397_v60, %s1544_s11  ;;  %v1399_v1 = vpop.eup %1398 }
 0xc38   :  { %v750_v3 = vadd.f32 1.0, %v1399_v1 }
 0xc3a   :  { %1400 = vrcp.f32 %v750_v3 }
 0xc44   :  { %v1401_v4 = vpop.eup %1400 }
 0xc45   :  { %v763_v8 = vmul.f32 %v1401_v4, %v761_v7 }
 0xca9   :  { %v766_v5 = vpop.permute.xlu0 %765 }
 0xcaa   :  { %v768_v6 = vmul.f32 %v1401_v4, %v766_v5 }
 0xcac   :  { %770 = vrot.lane.b32.xlu1 %v768_v6, %s1544_s11 }
 0xd1e   :  { %v771_v10 = vpop.permute.xlu1 %770 }
 0xd1f   :  { %v773_v11 = vadd.f32 %v771_v10, %v763_v8 }
 0xd21   :  { %1402 = vtanh.f32 %v773_v11  ;;  %v884_v30 = vrot.slane %v773_v11, 7 }
 0xd22   :  { %1404 = vpow2.f32 %v1186_v14 }
 0xd2b   :  { %v1403_v12 = vpop.eup %1402 }
 0xd2c   :  { %776 = vrot.lane.b32.xlu0 %v1403_v12, %s1544_s11  ;;  %v1405_v15 = vpop.eup %1404 }
 0xd2d   :  { %v757_v16 = vadd.f32 1.0, %v1405_v15 }
 0xd2f   :  { %1406 = vrcp.f32 %v757_v16 }
 0xd39   :  { %v1407_v17 = vpop.eup %1406 }
 0xd9e   :  { %v777_v18 = vpop.permute.xlu0 %776 }
 0xd9f   :  { %v1761_v19 = vmul.f32 %v1407_v17, %v777_v18 }
 0xda1   :  { %v786_v21 = vrot.slane %v1761_v19, 4 }
 0xda3   :  { %787 = vrot.lane.b32.xlu1 %v786_v21, %s1544_s11 }
 0xe15   :  { %v788_v23 = vpop.permute.xlu1 %787 }
 0xe16   :  { %1187 = vmatmul.mubr.msk.f32.vlgmr.msra.gmra.mrb[6].mxu0 %vm92_vm0, %v788_v23 }
 0xe17   :  { %1327 = vmatpush1.bf16.msra.mxu0 %v1627_v13  ;;  %1101 = vmatprep.mubr.f32.mxu0 %v1543_v0 }
 0xe18   :  { %1329 = vmatprep.subr.bf16.mxu0 %v1631_v22 }
 0xe1b   :  { %1331 = vmatpush1.bf16.msra.mxu0 %v1633_v26 }
 0xe1c   :  { %1333 = vmatprep.subr.bf16.mxu0 %v1636_v35 }
 0xe1f   :  { %1335 = vmatpush1.bf16.msra.mxu0 %v1639_v39 }
 0xe20   :  { %1337 = vmatprep.subr.bf16.mxu0 %v1642_v44 }
 0xe23   :  { %1339 = vmatpush1.bf16.msra.mxu0 %v1645_v48 }
 0xee9   :  { %v857_v24 = vpop.f32.mrb[6].mxu0 }
 0xeea   :  { %v859_v25 = vpop.f32.mrb[7].mxu0  ;;  %v864_v0 = vrot.slane %v857_v24, 3 }
 0xeeb   :  { %v865_v27 = vrot.slane %v859_v25, 3 }
 0xeec   :  { %v868_v22 = vadd.f32 %v864_v0, %v1681_v2 }
 0xeed   :  { %v869_v28 = vadd.f32 %v865_v27, %v1677_v59 }
 0xeee   :  { %v1188_v26 = vmul.f32 -1.442695, %v868_v22 }
 0xeef   :  { %1408 = vtanh.f32 %v869_v28  ;;  %v1189_v36 = vmul.f32 -1.442695, %v869_v28 }
 0xef0   :  { %1410 = vpow2.f32 %v1188_v26 }
 0xef9   :  { %v1409_v13 = vpop.eup %1408 }
 0xefa   :  { %888 = vrot.lane.b32.xlu0 %v1409_v13, %s1544_s11  ;;  %v1411_v35 = vpop.eup %1410 }
 0xefb   :  { %v873_v39 = vadd.f32 1.0, %v1411_v35 }
 0xefd   :  { %1412 = vrcp.f32 %v873_v39 }
 0xf07   :  { %v1413_v44 = vpop.eup %1412 }
 0xf08   :  { %v886_v31 = vmul.f32 %v1413_v44, %v884_v30 }
 0xf6c   :  { %v889_v29 = vpop.permute.xlu0 %888 }
 0xf6d   :  { %v891_v48 = vmul.f32 %v1413_v44, %v889_v29 }
 0xf6f   :  { %893 = vrot.lane.b32.xlu1 %v891_v48, %s1544_s11 }
 0xfe1   :  { %v894_v32 = vpop.permute.xlu1 %893 }
 0xfe2   :  { %v896_v33 = vadd.f32 %v894_v32, %v886_v31 }
 0xfe4   :  { %1414 = vtanh.f32 %v896_v33  ;;  %v1007_v62 = vrot.slane %v896_v33, 7 }
 0xfe5   :  { %1416 = vpow2.f32 %v1189_v36 }
 0xfee   :  { %v1415_v34 = vpop.eup %1414 }
 0xfef   :  { %899 = vrot.lane.b32.xlu0 %v1415_v34, %s1544_s11  ;;  %v1417_v37 = vpop.eup %1416 }
 0xff0   :  { %v880_v9 = vadd.f32 1.0, %v1417_v37 }
 0xff2   :  { %1418 = vrcp.f32 %v880_v9 }
 0xffc   :  { %v1419_v38 = vpop.eup %1418 }
0x1061   :  { %v900_v40 = vpop.permute.xlu0 %899 }
0x1062   :  { %v902_v41 = vmul.f32 %v1419_v38, %v900_v40 }
0x1064   :  { %v909_v42 = vrot.slane %v902_v41, 5 }
0x1066   :  { %910 = vrot.lane.b32.xlu1 %v909_v42, %s1544_s11 }
0x10d8   :  { %v911_v43 = vpop.permute.xlu1 %910 }
0x10d9   :  { %1190 = vmatmul.mubr.msk.f32.vlgmr.msra.gmra.mrb[6].mxu1 %vm92_vm0, %v911_v43 }
0x11ac   :  { %v980_v45 = vpop.f32.mrb[6].mxu1 }
0x11ad   :  { %v982_v46 = vpop.f32.mrb[7].mxu1  ;;  %v987_v52 = vrot.slane %v980_v45, 2 }
0x11ae   :  { %v988_v47 = vrot.slane %v982_v46, 2 }
0x11af   :  { %v991_v54 = vadd.f32 %v987_v52, %v1681_v2 }
0x11b0   :  { %v992_v49 = vadd.f32 %v988_v47, %v1677_v59 }
0x11b1   :  { %v1191_v55 = vmul.f32 -1.442695, %v991_v54 }
0x11b2   :  { %1420 = vtanh.f32 %v992_v49  ;;  %v1192_v5 = vmul.f32 -1.442695, %v992_v49 }
0x11b3   :  { %1422 = vpow2.f32 %v1191_v55 }
0x11bc   :  { %v1421_v50 = vpop.eup %1420 }
0x11bd   :  { %1011 = vrot.lane.b32.xlu0 %v1421_v50, %s1544_s11  ;;  %v1423_v56 = vpop.eup %1422 }
0x11be   :  { %v996_v57 = vadd.f32 1.0, %v1423_v56 }
0x11c0   :  { %1424 = vrcp.f32 %v996_v57 }
0x11ca   :  { %v1425_v58 = vpop.eup %1424 }
0x11cb   :  { %v1009_v63 = vmul.f32 %v1425_v58, %v1007_v62 }
0x122f   :  { %v1012_v60 = vpop.permute.xlu0 %1011 }
0x1230   :  { %v1014_v61 = vmul.f32 %v1425_v58, %v1012_v60 }
0x1232   :  { %1016 = vrot.lane.b32.xlu1 %v1014_v61, %s1544_s11 }
0x12a4   :  { %v1017_v1 = vpop.permute.xlu1 %1016 }
0x12a5   :  { %v1019_v3 = vadd.f32 %v1017_v1, %v1009_v63 }
0x12a7   :  { %1426 = vtanh.f32 %v1019_v3 }
0x12a8   :  { %1428 = vpow2.f32 %v1192_v5 }
0x12b1   :  { %v1427_v4 = vpop.eup %1426 }
0x12b2   :  { %1022 = vrot.lane.b32.xlu0 %v1427_v4, %s1544_s11  ;;  %v1429_v6 = vpop.eup %1428 }
0x12b3   :  { %v1003_v7 = vadd.f32 1.0, %v1429_v6 }
0x12b5   :  { %1430 = vrcp.f32 %v1003_v7 }
0x12bf   :  { %v1431_v8 = vpop.eup %1430 }
0x1324   :  { %v1023_v10 = vpop.permute.xlu0 %1022 }
0x1325   :  { %v1025_v11 = vmul.f32 %v1431_v8, %v1023_v10 }
0x1327   :  { %v1032_v12 = vrot.slane %v1025_v11, 6 }
0x1329   :  { %1033 = vrot.lane.b32.xlu1 %v1032_v12, %s1544_s11 }
0x139b   :  { %v1034_v14 = vpop.permute.xlu1 %1033 }
0x139c   :  { %1193 = vmatmul.mubr.msk.f32.vlgmr.msra.gmra.mrb[8].mxu0 %vm92_vm0, %v1034_v14 }
0x146f   :  { %v1103_v15 = vpop.f32.mrb[8].mxu0 }
0x1470   :  { %v1105_v16 = vpop.f32.mrb[9].mxu0  ;;  %v1110_v23 = vrot.slane %v1103_v15, 1 }
0x1471   :  { %v1111_v17 = vrot.slane %v1105_v16, 1 }
0x1472   :  { %v1114_v24 = vadd.f32 %v1110_v23, %v1681_v2 }
0x1473   :  { %v1115_v18 = vadd.f32 %v1111_v17, %v1677_v59  ;;  %v1130_v59 = vrot.slane %v1019_v3, 7 }
0x1474   :  { %v1194_v25 = vmul.f32 -1.442695, %v1114_v24 }
0x1475   :  { %1432 = vtanh.f32 %v1115_v18 }
0x1476   :  { %1434 = vpow2.f32 %v1194_v25 }
0x147f   :  { %v1433_v21 = vpop.eup %1432 }
0x1480   :  { %1134 = vrot.lane.b32.xlu0 %v1433_v21, %s1544_s11  ;;  %v1435_v27 = vpop.eup %1434 }
0x1481   :  { %v1119_v28 = vadd.f32 1.0, %v1435_v27 }
0x1483   :  { %1436 = vrcp.f32 %v1119_v28 }
0x148d   :  { %v1437_v13 = vpop.eup %1436 }
0x148e   :  { %v1132_v2 = vmul.f32 %v1437_v13, %v1130_v59 }
0x14f2   :  { %v1135_v0 = vpop.permute.xlu0 %1134 }
0x14f3   :  { %v1137_v22 = vmul.f32 %v1437_v13, %v1135_v0 }
0x14f5   :  { %1139 = vrot.lane.b32.xlu1 %v1137_v22, %s1544_s11 }
0x14f9   :  { %412 = vrot.lane.b32.xlu1 %v1705_v53, %s1544_s11  ;;  %v1195_v53 = vmul.f32 -1.442695, %v1115_v18 }
0x14fd   :  { %658 = vrot.lane.b32.xlu1 %v1743_v51, %s1544_s11 }
0x1501   :  { %904 = vrot.lane.b32.xlu1 %v902_v41, %s1544_s11 }
0x1567   :  { %v1140_v26 = vpop.permute.xlu1 %1139 }
0x1568   :  { %v1142_v35 = vadd.f32 %v1140_v26, %v1132_v2 }
0x156a   :  { %1438 = vtanh.f32 %v1142_v35 }
0x156b   :  { %v413_v39 = vpop.permute.xlu1 %412  ;;  %1440 = vpow2.f32 %v1195_v53 }
0x156c   :  { %416 = vst.msk [vmem:[#allocation8] sm:$0x2] %vm415_vm2, %v413_v39 }
0x156f   :  { %v659_v44 = vpop.permute.xlu1 %658 }
0x1570   :  { %662 = vst.msk [vmem:[#allocation8] sm:$0x8] %vm661_vm3, %v659_v44 }
0x1573   :  { %v905_v29 = vpop.permute.xlu1 %904 }
0x1574   :  { %v1439_v48 = vpop.eup %1438  ;;  %908 = vst.msk [vmem:[#allocation8] sm:$0x20] %vm907_vm4, %v905_v29 }
0x1575   :  { %1145 = vrot.lane.b32.xlu0 %v1439_v48, %s1544_s11  ;;  %v1441_v51 = vpop.eup %1440 }
0x1576   :  { %v1126_v30 = vadd.f32 1.0, %v1441_v51 }
0x1578   :  { %1442 = vrcp.f32 %v1126_v30 }
0x1579   :  { %535 = vrot.lane.b32.xlu0 %v1724_v20, %s1544_s11 }
0x157d   :  { %781 = vrot.lane.b32.xlu0 %v1761_v19, %s1544_s11 }
0x1581   :  { %1027 = vrot.lane.b32.xlu0 %v1025_v11, %s1544_s11 }
0x1582   :  { %v1443_v31 = vpop.eup %1442 }
0x15e7   :  { %v1146_v32 = vpop.permute.xlu0 %1145 }
0x15e8   :  { %v1148_v33 = vmul.f32 %v1443_v31, %v1146_v32 }
0x15ea   :  { %1150 = vrot.lane.b32.xlu1 %v1148_v33, %s1544_s11 }
0x15eb   :  { %v536_v34 = vpop.permute.xlu0 %535 }
0x15ec   :  { %539 = vst.msk [vmem:[#allocation8] sm:$0x4] %vm538_vm5, %v536_v34 }
0x15ef   :  { %v782_v20 = vpop.permute.xlu0 %781 }
0x15f0   :  { %785 = vst.msk [vmem:[#allocation8] sm:$0x10] %vm784_vm6, %v782_v20 }
0x15f3   :  { %v1028_v19 = vpop.permute.xlu0 %1027 }
0x15f4   :  { %1031 = vst.msk [vmem:[#allocation8] sm:$0x40] %vm1030_vm7, %v1028_v19 }
0x165c   :  { %v1151_v36 = vpop.permute.xlu1 %1150 }
0x165d   :  { %1154 = vst.msk [vmem:[#allocation8] sm:$0x80] %vm1153_vm8, %v1151_v36 }
0x165e   :  { %1521 = shalt.err (!%p1518_p0)
}
0x165f   :  { %s1522_s17 = scalar_lea.hbm %s1822_s6, 128 }
0x1660   :  { %p1523_p1 = scmp.ne.s32.totalorder %s1822_s6, %s1522_s17  ;;  %p1526_p2 = scmp.lt.u32.totalorder %s1522_s17, %s1822_s6 }
0x1662   :  { %p1528_p3 = pnand %p1526_p2, %p1523_p1 }
0x1664   :  { %1531 = shalt.err (!%p1528_p3)
}
0x1665   :  { %1164 = dma.vmem_to_hbm [thread:$0]  %s1162_s13, 128, %s1822_s6, [#allocation4]  }
0x1666   :  { %1536 = dma.done.wait [#allocation4], 128  }
0x1667   :  { %1537 = vsyncadd [#allocation4], 4294967168 }
0x1668   :  { %1168 = vsyncpa [#allocation3], 1 }
0x1669   :  { %1169 = vsyncpa [#allocation6], 1 }
0x166a   :  { %1170 = vsyncpa [#allocation4], 1 }

</bundles_post_ra>
